<compile_context>
chip_gen: v7x
topology: tpu7x:2x2x1
jax: 0.10.0
libtpu: 0.0.40
codegen_flags: <defaults>
</compile_context>

<pallas_src>
import functools

import jax
import jax.numpy as jnp
from jax.experimental import pallas as pl
from jax.experimental.pallas import tpu as pltpu


HIDDEN = 128                           # hidden width of the Critic MLP
_MAX_TILE_ROWS = 8192                  # upper bound on batch-tile rows
_TARGET_TILE_BYTES = 2 * 1024 * 1024   # aim for ~2 MiB of x per grid step
_VMEM_BUDGET = 24 * 1024 * 1024        # stay well under the 32 MiB scoped cap
_MIN_PALLAS_BATCH = 256                # below this, plain XLA beats a custom call


def _cdiv(a, b):
    return -(-a // b)


def _round_up(x, m):
    return ((x + m - 1) // m) * m


def _critic_kernel(x_ref, w1_ref, bw_ref, b2_ref, o_ref, *, chunk, compute_dtype):
    """One batch tile of Critic: ReLU(x @ W1 + b1) @ w2 + b2.

    Layouts (batch on sublanes, hidden on lanes):
      x_ref : [TB, S]   input dtype (cast to compute_dtype in-kernel) -- streamed
      w1_ref: [S, 128]  compute dtype                                 -- resident
      bw_ref: [2, 128]  f32, row 0 = b1, row 1 = w2                   -- resident
      b2_ref: [1, 1]    f32 in SMEM
      o_ref : [TB, 1]   f32
    """
    w1 = w1_ref[...]
    b1 = bw_ref[0:1, :]            # [1, 128]
    w2 = bw_ref[1:2, :]            # [1, 128]
    b2 = b2_ref[0, 0]

    n_chunks = x_ref.shape[0] // chunk   # static; tb % chunk == 0 by construction
    # Fully-unrolled chunk loop (static ref slices are free views). Chunking keeps
    # the f32 hidden activations at [chunk, 128] instead of a [TB, 128] slab.
    for c in range(n_chunks):
        lo = c * chunk
        xc = x_ref[lo:lo + chunk, :].astype(compute_dtype)        # VPU cast under DMA
        h = jnp.dot(xc, w1, preferred_element_type=jnp.float32)   # MXU [chunk, 128]
        h = jnp.maximum(h + b1, 0.0)                              # bias + ReLU (VPU)
        # Output dim is 1: VPU multiply + lane reduce instead of an N=1 MXU matmul.
        out = jnp.sum(h * w2, axis=1, keepdims=True) + b2         # [chunk, 1]
        o_ref[lo:lo + chunk, :] = out.astype(o_ref.dtype)


def _choose_tile(batch, state_dim, x_itemsize, w_itemsize):
    """Pick (tile_rows, chunk_rows) for the batch grid."""
    target = _TARGET_TILE_BYTES // max(1, state_dim * x_itemsize)
    target = max(128, min(_MAX_TILE_ROWS, target))
    target = _round_up(target, 128)
    num_tiles = _cdiv(batch, target)
    if num_tiles == 1:
        num_tiles = 2                       # keep both v7x TensorCores busy
    tb = _round_up(_cdiv(batch, num_tiles), 128)

    def vmem_bytes(rows):
        return (2 * rows * state_dim * x_itemsize    # x tile, double-buffered
                + 2 * rows * 4                       # output tile, double-buffered
                + 2 * state_dim * HIDDEN * w_itemsize
                + 2 * 2 * HIDDEN * 4)

    while tb > 128 and vmem_bytes(tb) > _VMEM_BUDGET:
        tb = _round_up(tb // 2, 128)

    chunk = 256 if tb % 256 == 0 else 128
    return tb, chunk


def critic_forward(x, w1, b1, w2, b2, *, compute_dtype=jnp.bfloat16):
    """Forward pass of Critic.  x: [B, S]; returns float32 [B, 1]."""
    batch, state_dim = x.shape
    assert w1.shape == (state_dim, HIDDEN)

    b1f = jnp.reshape(b1, (1, HIDDEN)).astype(jnp.float32)
    w2f = jnp.reshape(w2, (1, HIDDEN)).astype(jnp.float32)
    b2f = jnp.reshape(b2, (1, 1)).astype(jnp.float32)

    if batch < _MIN_PALLAS_BATCH:
        # Tiny RL-step batches: custom-call launch would dominate; plain XLA.
        h = jnp.maximum(jnp.dot(x.astype(jnp.float32), w1.astype(jnp.float32)) + b1f, 0.0)
        return jnp.dot(h, w2f.T) + b2f

    x_itemsize = jnp.dtype(x.dtype).itemsize
    w_itemsize = jnp.dtype(compute_dtype).itemsize
    tb, chunk = _choose_tile(batch, state_dim, x_itemsize, w_itemsize)
    grid = (_cdiv(batch, tb),)

    w1c = w1.astype(compute_dtype)             # [S, 128] -- tiny pre-cast only
    bw = jnp.concatenate([b1f, w2f], axis=0)   # [2, 128] resident pack

    cost = pl.CostEstimate(
        flops=2 * batch * state_dim * HIDDEN + 4 * batch * HIDDEN,
        transcendentals=0,
        bytes_accessed=(batch * state_dim * x_itemsize
                        + state_dim * HIDDEN * w_itemsize
                        + 2 * HIDDEN * 4 + 4
                        + batch * 4),
    )

    kernel = functools.partial(_critic_kernel, chunk=chunk, compute_dtype=compute_dtype)

    return pl.pallas_call(
        kernel,
        out_shape=jax.ShapeDtypeStruct((batch, 1), jnp.float32),
        grid=grid,
        in_specs=[
            pl.BlockSpec((tb, state_dim), lambda i: (i, 0)),        # x tile streams
            pl.BlockSpec((state_dim, HIDDEN), lambda i: (0, 0)),    # W1 resident
            pl.BlockSpec((2, HIDDEN), lambda i: (0, 0)),            # [b1; w2] resident
            pl.BlockSpec(memory_space=pltpu.MemorySpace.SMEM),      # b2 scalar
        ],
        out_specs=pl.BlockSpec((tb, 1), lambda i: (i, 0)),
        compiler_params=pltpu.CompilerParams(
            dimension_semantics=("parallel",),          # megacore on v7x
            vmem_limit_bytes=32 * 1024 * 1024,
        ),
        cost_estimate=cost,
    )(x, w1c, bw, b2f)


def init_critic_params(key, state_dim, hidden=HIDDEN, dtype=jnp.float32):
    """Deterministic init mimicking PyTorch nn.Linear default
    (U(-1/sqrt(fan_in), 1/sqrt(fan_in)))."""
    k1, k2, k3, k4 = jax.random.split(key, 4)
    bound1 = 1.0 / jnp.sqrt(jnp.array(state_dim, dtype))
    bound2 = 1.0 / jnp.sqrt(jnp.array(hidden, dtype))
    w1 = jax.random.uniform(k1, (state_dim, hidden), dtype, -bound1, bound1)
    b1 = jax.random.uniform(k2, (hidden,), dtype, -bound1, bound1)
    w2 = jax.random.uniform(k3, (hidden, 1), dtype, -bound2, bound2)
    b2 = jax.random.uniform(k4, (1,), dtype, -bound2, bound2)
    return w1, b1, w2, b2


def critic_reference(x, w1, b1, w2, b2):
    h = jnp.maximum(x @ w1 + jnp.reshape(b1, (1, HIDDEN)), 0.0)
    return h @ jnp.reshape(w2, (HIDDEN, 1)) + jnp.reshape(b2, (1, 1))


if __name__ == "__main__":
    key = jax.random.PRNGKey(0)
    k_params, k1, k2, k3 = jax.random.split(key, 4)

    state_dim = 16
    w1, b1, w2, b2 = init_critic_params(k_params, state_dim)

    # 1) Tiny RL-step batch -> plain-XLA fast path (custom call not worth it).
    x_tiny = jax.random.normal(k1, (8, state_dim), jnp.float32)
    out_tiny = jax.block_until_ready(critic_forward(x_tiny, w1, b1, w2, b2))
    assert out_tiny.shape == (8, 1)
    assert jnp.allclose(out_tiny, critic_reference(x_tiny, w1, b1, w2, b2),
                        atol=1e-5, rtol=1e-5), "small-batch fallback mismatch"

    # 2) Multi-tile Pallas path, f32 compute (2 grid steps, ragged tail tile).
    x_big = jax.random.normal(k2, (640, state_dim), jnp.float32)
    ref_big = critic_reference(x_big, w1, b1, w2, b2)
    out_f32 = jax.block_until_ready(
        critic_forward(x_big, w1, b1, w2, b2, compute_dtype=jnp.float32))
    assert out_f32.shape == (640, 1)
    assert jnp.allclose(out_f32, ref_big, atol=1e-4, rtol=1e-4), \
        "f32 kernel mismatch vs reference"

    # 3) Default bf16-MXU compute path (f32 accumulation) -> relaxed tolerance.
    out_bf16 = jax.block_until_ready(critic_forward(x_big, w1, b1, w2, b2))
    assert out_bf16.shape == (640, 1)
    assert jnp.allclose(out_bf16, ref_big, atol=5e-2, rtol=5e-2), \
        "bf16 kernel mismatch vs reference"

    # 4) Ragged batch that is not a multiple of 128 (partially valid last tile).
    x_odd = jax.random.normal(k3, (333, state_dim), jnp.float32)
    out_odd = jax.block_until_ready(
        critic_forward(x_odd, w1, b1, w2, b2, compute_dtype=jnp.float32))
    assert out_odd.shape == (333, 1)
    assert jnp.allclose(out_odd, critic_reference(x_odd, w1, b1, w2, b2),
                        atol=1e-4, rtol=1e-4), "ragged-batch kernel mismatch"

    print("KERNEL_OK")
</pallas_src>

<mosaic_0001>
module attributes {stable_mosaic.version = 11 : i64} {
  func.func @_critic_kernel(%arg0: i32, %arg1: memref<384x16xf32, #tpu.memory_space<vmem>>, %arg2: memref<16x128xf32, #tpu.memory_space<vmem>>, %arg3: memref<2x128xf32, #tpu.memory_space<vmem>>, %arg4: memref<1x1xf32, #tpu.memory_space<smem>>, %arg5: memref<384x1xf32, #tpu.memory_space<vmem>>) attributes {dimension_semantics = [#tpu.dimension_semantics<parallel>], iteration_bounds = array<i64: 2>, scalar_prefetch = 0 : i64, scratch_operands = 0 : i64, tpu.core_type = #tpu.core_type<tc>, window_params = [{transform_indices = @transform_0, window_bounds = array<i64: 384, 16>}, {pipeline_mode = #tpu.pipeline_mode<synchronous>, transform_indices = @transform_1, window_bounds = array<i64: 16, 128>}, {pipeline_mode = #tpu.pipeline_mode<synchronous>, transform_indices = @transform_2, window_bounds = array<i64: 2, 128>}, {transform_indices = @transform_3, window_bounds = array<i64: 1, 1>}, {transform_indices = @transform_4, window_bounds = array<i64: 384, 1>}]} {
    %c0 = arith.constant 0 : index
    %c0_0 = arith.constant 0 : index
    %0 = vector.load %arg2[%c0, %c0_0] : memref<16x128xf32, #tpu.memory_space<vmem>>, vector<16x128xf32>
    %c0_1 = arith.constant 0 : index
    %c0_2 = arith.constant 0 : index
    %1 = vector.load %arg3[%c0_1, %c0_2] : memref<2x128xf32, #tpu.memory_space<vmem>>, vector<1x128xf32>
    %c1 = arith.constant 1 : index
    %c0_3 = arith.constant 0 : index
    %2 = vector.load %arg3[%c1, %c0_3] : memref<2x128xf32, #tpu.memory_space<vmem>>, vector<1x128xf32>
    %c0_4 = arith.constant 0 : index
    %c0_5 = arith.constant 0 : index
    %3 = memref.load %arg4[%c0_4, %c0_5] : memref<1x1xf32, #tpu.memory_space<smem>>
    %c0_6 = arith.constant 0 : index
    %c0_7 = arith.constant 0 : index
    %4 = vector.load %arg1[%c0_6, %c0_7] : memref<384x16xf32, #tpu.memory_space<vmem>>, vector<128x16xf32>
    %cst = arith.constant dense<0.000000e+00> : vector<128x128xf32>
    %5 = tpu.matmul %4, %0, %cst {dimension_numbers = #tpu.dot_dimension_numbers<[1], [0], [0], [1], [0, 0, 1, 1], [], []>} : vector<128x16xf32>, vector<16x128xf32>, vector<128x128xf32> -> vector<128x128xf32>
    %6 = vector.broadcast %1 : vector<1x128xf32> to vector<128x128xf32>
    %7 = arith.addf %5, %6 : vector<128x128xf32>
    %cst_8 = arith.constant 0.000000e+00 : f32
    %8 = vector.broadcast %cst_8 : f32 to vector<128x128xf32>
    %9 = arith.maximumf %7, %8 : vector<128x128xf32>
    %10 = vector.broadcast %2 : vector<1x128xf32> to vector<128x128xf32>
    %11 = arith.mulf %9, %10 : vector<128x128xf32>
    %cst_9 = arith.constant dense<0.000000e+00> : vector<128xf32>
    %12 = vector.multi_reduction <add>, %11, %cst_9 [1] : vector<128x128xf32> to vector<128xf32>
    %13 = vector.shape_cast %12 : vector<128xf32> to vector<128x1xf32>
    %14 = vector.broadcast %3 : f32 to vector<128x1xf32>
    %15 = arith.addf %13, %14 : vector<128x1xf32>
    %c0_10 = arith.constant 0 : index
    %c0_11 = arith.constant 0 : index
    %16 = vector.load %arg5[%c0_10, %c0_11] : memref<384x1xf32, #tpu.memory_space<vmem>>, vector<128x1xf32>
    tpu.vector_store %arg5[%c0_10, %c0_11], %15 {strides = array<i32>} : memref<384x1xf32, #tpu.memory_space<vmem>>, vector<128x1xf32>,
    %c128 = arith.constant 128 : index
    %c0_12 = arith.constant 0 : index
    %17 = vector.load %arg1[%c128, %c0_12] : memref<384x16xf32, #tpu.memory_space<vmem>>, vector<128x16xf32>
    %cst_13 = arith.constant dense<0.000000e+00> : vector<128x128xf32>
    %18 = tpu.matmul %17, %0, %cst_13 {dimension_numbers = #tpu.dot_dimension_numbers<[1], [0], [0], [1], [0, 0, 1, 1], [], []>} : vector<128x16xf32>, vector<16x128xf32>, vector<128x128xf32> -> vector<128x128xf32>
    %19 = vector.broadcast %1 : vector<1x128xf32> to vector<128x128xf32>
    %20 = arith.addf %18, %19 : vector<128x128xf32>
    %cst_14 = arith.constant 0.000000e+00 : f32
    %21 = vector.broadcast %cst_14 : f32 to vector<128x128xf32>
    %22 = arith.maximumf %20, %21 : vector<128x128xf32>
    %23 = vector.broadcast %2 : vector<1x128xf32> to vector<128x128xf32>
    %24 = arith.mulf %22, %23 : vector<128x128xf32>
    %cst_15 = arith.constant dense<0.000000e+00> : vector<128xf32>
    %25 = vector.multi_reduction <add>, %24, %cst_15 [1] : vector<128x128xf32> to vector<128xf32>
    %26 = vector.shape_cast %25 : vector<128xf32> to vector<128x1xf32>
    %27 = vector.broadcast %3 : f32 to vector<128x1xf32>
    %28 = arith.addf %26, %27 : vector<128x1xf32>
    %c128_16 = arith.constant 128 : index
    %c0_17 = arith.constant 0 : index
    %29 = vector.load %arg5[%c128_16, %c0_17] : memref<384x1xf32, #tpu.memory_space<vmem>>, vector<128x1xf32>
    tpu.vector_store %arg5[%c128_16, %c0_17], %28 {strides = array<i32>} : memref<384x1xf32, #tpu.memory_space<vmem>>, vector<128x1xf32>,
    %c256 = arith.constant 256 : index
    %c0_18 = arith.constant 0 : index
    %30 = vector.load %arg1[%c256, %c0_18] : memref<384x16xf32, #tpu.memory_space<vmem>>, vector<128x16xf32>
    %cst_19 = arith.constant dense<0.000000e+00> : vector<128x128xf32>
    %31 = tpu.matmul %30, %0, %cst_19 {dimension_numbers = #tpu.dot_dimension_numbers<[1], [0], [0], [1], [0, 0, 1, 1], [], []>} : vector<128x16xf32>, vector<16x128xf32>, vector<128x128xf32> -> vector<128x128xf32>
    %32 = vector.broadcast %1 : vector<1x128xf32> to vector<128x128xf32>
    %33 = arith.addf %31, %32 : vector<128x128xf32>
    %cst_20 = arith.constant 0.000000e+00 : f32
    %34 = vector.broadcast %cst_20 : f32 to vector<128x128xf32>
    %35 = arith.maximumf %33, %34 : vector<128x128xf32>
    %36 = vector.broadcast %2 : vector<1x128xf32> to vector<128x128xf32>
    %37 = arith.mulf %35, %36 : vector<128x128xf32>
    %cst_21 = arith.constant dense<0.000000e+00> : vector<128xf32>
    %38 = vector.multi_reduction <add>, %37, %cst_21 [1] : vector<128x128xf32> to vector<128xf32>
    %39 = vector.shape_cast %38 : vector<128xf32> to vector<128x1xf32>
    %40 = vector.broadcast %3 : f32 to vector<128x1xf32>
    %41 = arith.addf %39, %40 : vector<128x1xf32>
    %c256_22 = arith.constant 256 : index
    %c0_23 = arith.constant 0 : index
    %42 = vector.load %arg5[%c256_22, %c0_23] : memref<384x1xf32, #tpu.memory_space<vmem>>, vector<128x1xf32>
    tpu.vector_store %arg5[%c256_22, %c0_23], %41 {strides = array<i32>} : memref<384x1xf32, #tpu.memory_space<vmem>>, vector<128x1xf32>,
    return
  }
  func.func @transform_0(%arg0: i32) -> (i32, i32) {
    %c0_i32 = arith.constant 0 : i32
    %c0_i32_0 = arith.constant 0 : i32
    return %arg0, %c0_i32 : i32, i32
  }
  func.func @transform_1(%arg0: i32) -> (i32, i32) {
    %c0_i32 = arith.constant 0 : i32
    %c0_i32_0 = arith.constant 0 : i32
    %c0_i32_1 = arith.constant 0 : i32
    return %c0_i32, %c0_i32_0 : i32, i32
  }
  func.func @transform_2(%arg0: i32) -> (i32, i32) {
    %c0_i32 = arith.constant 0 : i32
    %c0_i32_0 = arith.constant 0 : i32
    %c0_i32_1 = arith.constant 0 : i32
    return %c0_i32, %c0_i32_0 : i32, i32
  }
  func.func @transform_3(%arg0: i32) -> (i32, i32) {
    %c0_i32 = arith.constant 0 : i32
    %c0_i32_0 = arith.constant 0 : i32
    %c0_i32_1 = arith.constant 0 : i32
    return %c0_i32, %c0_i32_0 : i32, i32
  }
  func.func @transform_4(%arg0: i32) -> (i32, i32) {
    %c0_i32 = arith.constant 0 : i32
    %c0_i32_0 = arith.constant 0 : i32
    return %arg0, %c0_i32 : i32, i32
  }
}

</mosaic_0001>

<bundles_post_ra>
// kernel: tpu_custom_call.1
= control target key start
LH: loop header
LB: loop body
LE: loop exit
PB: predicated region body
PF: predicated region fallthrough
CT: control target
= control target key end

     0   :  { %s2602_s0 = inlined_call_operand.vmem [shape: f32[640,16], index: 0, kind: input, shape index: {}]   ;;  %s2603_s1 = inlined_call_operand.vmem [shape: f32[16,128], index: 1, kind: input, shape index: {}]   ;;  %s2604_s2 = inlined_call_operand.vmem [shape: f32[2,128], index: 2, kind: input, shape index: {}]   ;;  %s2605_s3 = inlined_call_operand.<no memory space> [shape: f32[1,1], index: 3, kind: input, shape index: {}]   ;;  %s2606_s4 = inlined_call_operand.vmem [shape: f32[640,1], index: 4, kind: output, shape index: {}]  }
   0x1   :  { %9 = sst [smem:[#allocation2]] %s2605_s3 }
   0x2   :  { %s1986_s17 = smov 0   ;;  %s1988_s18 = smov 0  }
   0x3   :  { %s1990_s19 = smov 0  }
   0x4 LB: > { %s1999_s3 = sadd.s32 4294967295, %s1924_s19   ;;  %s2001_s20 = sadd.s32 1, %s1924_s19   ;;  %s1924_s19 = sphi %s1990_s19, %s2615_s19   ;;  %s1920_s18 = sphi %s1988_s18, %s2614_s18   ;;  %s1916_s17 = sphi %s1986_s17, %s2613_s17  }
   0x5   : > { %s108_s21 = ssub.s32 %s1924_s19, %s2001_s20  ;;  %s111_s22 = sadd.s32 1, %s1920_s18 }
   0x6   : > { %p109_p0 = scmp.eq.s32.totalorder %s108_s21, 0  ;;  %p121_p1 = scmp.ne.s32.totalorder %s1920_s18, %s1916_s17 }
   0x7   : > { %p122_p2 = scmp.eq.s32.totalorder %s1999_s3, 1  ;;  %p1559_p3 = scmp.ge.s32.totalorder %s1924_s19, 1 }
   0x8   : > { %s2009_s23 = scalar_select %p109_p0, %s1920_s18, %s111_s22  }
   0x9   : > { %p2011_p4 = por %p122_p2, %p121_p1  ;;  %p172_p5 = scmp.lt.s32.totalorder %s1924_s19, 3 }
   0xb   : > { %p173_p6 = pnand %p1559_p3, %p172_p5 }
   0xc   : > { %v220_v0 = vld [vmem:[%s2603_s1] sm:$0xff] (!%p173_p6)  ;;  %v221_v1 = vld [vmem:[%s2603_s1 + $0x8] sm:$0xff] (!%p173_p6)  ;;  %s2022_s29 = smul.u32 (!%p173_p6), 48, %s1999_s3  ;;  %vm245_vm0 = vcmask (!%p173_p6), 130048   ;;  %s224_s13 = sld [smem:[#allocation2]] (!%p173_p6)  ;;  %vm524_vm1 = vcmask (!%p173_p6), 7168  }
   0xd   : > { %176 = sbr.rel (%p173_p6) target bundleno = 558 (0x22e), region = 36  ;;  %v1762_v2 = vpack.c.bf16 (!%p173_p6), %v221_v1, %v220_v0  ;;  %v2130_v51 = vld [vmem:[%s2604_s2] ss:$0 sm:$0xff] (!%p173_p6)  ;;  %v2138_v59 = vld [vmem:[%s2604_s2 + $0x1] ss:$0 sm:$0xff] (!%p173_p6)  ;;  %s198_s14 = sand.u32 (!%p173_p6), 1, %s1916_s17  }
   0xe   : > { %p206_p7 = scmp.lt.s32.totalorder (!%p173_p6), %s2022_s29, 79  ;;  %s1776_s15 = smul.u32 (!%p173_p6), 384, %s198_s14 }
   0xf   : > { %1763 = vmatprep.subr.bf16.mxu0 (!%p173_p6), %v1762_v2  ;;  %1774 = vmatprep.subr.bf16.mxu1 (!%p173_p6), %v1762_v2 }
  0x10   : > { %1765 = vmatpush3.bf16.msra.mxu0 (!%p173_p6), %v1762_v2  ;;  %1775 = vmatpush3.bf16.msra.mxu1 (!%p173_p6), %v1762_v2  ;;  %s2289_s16 = scalar_lea.vmem (!%p173_p6), [#allocation3], %s1776_s15  }
  0x11   : > { %1767 = vmatprep.subr.bf16.mxu1 (!%p173_p6), %v1762_v2  ;;  %1771 = vmatprep.subr.bf16.mxu0 (!%p173_p6), %v1762_v2 }
  0x14   : > { %s207_s30 = scalar_select %p206_p7, %s2022_s29, 79 }
  0x15   : > { %s1159_s17 = ssub.s32 (%p2011_p4), 80, %s2022_s29  ;;  %s1623_s19 = smul.u32 (%p2011_p4), 384, %s1999_s3 }
  0x16   : > { %s1560_s5 = sshll.u32 %s207_s30, 3  ;;  %p1160_p8 = scmp.lt.s32.totalorder (%p2011_p4), %s1159_s17, 48 }
  0x17   : > { %s2029_s8 = scalar_lea.vmem %s2602_s0, %s1560_s5  ;;  %s2440_s25 = scalar_lea.vmem (%p2011_p4), %s2606_s4, %s1623_s19  }
  0x18   : > { %v225_v3 = vld [vmem:[%s2029_s8] sm:$0xff]  ;;  %v226_v5 = vld [vmem:[%s2029_s8 + $0x8] sm:$0xff]  ;;  %v227_v7 = vld [vmem:[%s2029_s8 + $0x10] sm:$0xff] }
  0x19   : > { %v233_v4 = vld [vmem:[%s2029_s8 + $0x40] sm:$0xff]  ;;  %1682 = vmatprep.mubr.msk.f32.mxu0 %vm245_vm0, %v225_v3  ;;  %v234_v6 = vld [vmem:[%s2029_s8 + $0x48] sm:$0xff]  ;;  %v235_v8 = vld [vmem:[%s2029_s8 + $0x50] sm:$0xff] }
  0x1a   : > { %1694 = vmatprep.mubr.msk.f32.mxu1 %vm245_vm0, %v233_v4  ;;  %1683 = vmatmul.mubr.msk.f32.vlgmr.msra.gmra.mrb[0].mxu0 %vm245_vm0, %v226_v5  ;;  %v228_v9 = vld [vmem:[%s2029_s8 + $0x18] sm:$0xff]  ;;  %v229_v11 = vld [vmem:[%s2029_s8 + $0x20] sm:$0xff]  ;;  %v230_v13 = vld [vmem:[%s2029_s8 + $0x28] sm:$0xff] }
  0x1b   : > { %1695 = vmatmul.mubr.msk.f32.vlgmr.msra.gmra.mrb[0].mxu1 %vm245_vm0, %v234_v6  ;;  %1685 = vmatprep.mubr.msk.f32.mxu0 %vm245_vm0, %v227_v7  ;;  %v236_v10 = vld [vmem:[%s2029_s8 + $0x58] sm:$0xff]  ;;  %v237_v12 = vld [vmem:[%s2029_s8 + $0x60] sm:$0xff]  ;;  %v238_v14 = vld [vmem:[%s2029_s8 + $0x68] sm:$0xff] }
  0x1c   : > { %1697 = vmatprep.mubr.msk.f32.mxu1 %vm245_vm0, %v235_v8  ;;  %1769 = vmatpush3.bf16.msra.mxu1 %v1762_v2  ;;  %v231_v15 = vld [vmem:[%s2029_s8 + $0x30] sm:$0xff]  ;;  %v232_v17 = vld [vmem:[%s2029_s8 + $0x38] sm:$0xff]  ;;  %v541_v19 = vld [vmem:[%s2029_s8 + $0x80] sm:$0xff] }
  0x1d   : > { %1773 = vmatpush3.bf16.msra.mxu0 %v1762_v2  ;;  %v239_v16 = vld [vmem:[%s2029_s8 + $0x70] sm:$0xff]  ;;  %v240_v18 = vld [vmem:[%s2029_s8 + $0x78] sm:$0xff]  ;;  %v846_v20 = vld [vmem:[%s2029_s8 + $0x100] sm:$0xff] }
  0x1e   : > { %1686 = vmatmul.mubr.msk.f32.gmra.mrb[2].mxu0 %vm245_vm0, %v228_v9  ;;  %v542_v21 = vld [vmem:[%s2029_s8 + $0x88] sm:$0xff]  ;;  %v543_v23 = vld [vmem:[%s2029_s8 + $0x90] sm:$0xff]  ;;  %v544_v25 = vld [vmem:[%s2029_s8 + $0x98] sm:$0xff] }
  0x1f   : > { %1698 = vmatmul.mubr.msk.f32.gmra.mrb[2].mxu1 %vm245_vm0, %v236_v10  ;;  %1688 = vmatprep.mubr.msk.f32.mxu0 %vm245_vm0, %v229_v11  ;;  %v847_v22 = vld [vmem:[%s2029_s8 + $0x108] sm:$0xff]  ;;  %v848_v24 = vld [vmem:[%s2029_s8 + $0x110] sm:$0xff]  ;;  %v849_v26 = vld [vmem:[%s2029_s8 + $0x118] sm:$0xff] }
  0x20   : > { %1700 = vmatprep.mubr.msk.f32.mxu1 %vm245_vm0, %v237_v12  ;;  %v545_v27 = vld [vmem:[%s2029_s8 + $0xa0] sm:$0xff]  ;;  %v546_v29 = vld [vmem:[%s2029_s8 + $0xa8] sm:$0xff]  ;;  %v547_v31 = vld [vmem:[%s2029_s8 + $0xb0] sm:$0xff] }
  0x21   : > { %v850_v28 = vld [vmem:[%s2029_s8 + $0x120] sm:$0xff]  ;;  %v851_v30 = vld [vmem:[%s2029_s8 + $0x128] sm:$0xff]  ;;  %v852_v32 = vld [vmem:[%s2029_s8 + $0x130] sm:$0xff] }
  0x22   : > { %1689 = vmatmul.mubr.msk.f32.gmra.mrb[4].mxu0 %vm245_vm0, %v230_v13  ;;  %v548_v33 = vld [vmem:[%s2029_s8 + $0xb8] sm:$0xff]  ;;  %v549_v35 = vld [vmem:[%s2029_s8 + $0xc0] sm:$0xff]  ;;  %v550_v37 = vld [vmem:[%s2029_s8 + $0xc8] sm:$0xff] }
  0x23   : > { %1701 = vmatmul.mubr.msk.f32.gmra.mrb[4].mxu1 %vm245_vm0, %v238_v14  ;;  %1691 = vmatprep.mubr.msk.f32.mxu0 %vm245_vm0, %v231_v15  ;;  %v853_v34 = vld [vmem:[%s2029_s8 + $0x138] sm:$0xff]  ;;  %v854_v36 = vld [vmem:[%s2029_s8 + $0x140] sm:$0xff]  ;;  %v855_v38 = vld [vmem:[%s2029_s8 + $0x148] sm:$0xff] }
  0x24   : > { %1703 = vmatprep.mubr.msk.f32.mxu1 %vm245_vm0, %v239_v16  ;;  %v551_v39 = vld [vmem:[%s2029_s8 + $0xd0] sm:$0xff]  ;;  %v552_v41 = vld [vmem:[%s2029_s8 + $0xd8] sm:$0xff]  ;;  %v553_v43 = vld [vmem:[%s2029_s8 + $0xe0] sm:$0xff] }
  0x25   : > { %v856_v40 = vld [vmem:[%s2029_s8 + $0x150] sm:$0xff]  ;;  %v857_v42 = vld [vmem:[%s2029_s8 + $0x158] sm:$0xff]  ;;  %v858_v44 = vld [vmem:[%s2029_s8 + $0x160] sm:$0xff] }
  0x26   : > { %1692 = vmatmul.mubr.msk.f32.gmra.mrb[6].mxu0 %vm245_vm0, %v232_v17  ;;  %v554_v45 = vld [vmem:[%s2029_s8 + $0xe8] sm:$0xff]  ;;  %v555_v47 = vld [vmem:[%s2029_s8 + $0xf0] sm:$0xff]  ;;  %v556_v49 = vld [vmem:[%s2029_s8 + $0xf8] sm:$0xff] }
  0x27   : > { %1704 = vmatmul.mubr.msk.f32.gmra.mrb[6].mxu1 %vm245_vm0, %v240_v18  ;;  %1738 = vmatprep.mubr.msk.f32.mxu0 %vm245_vm0, %v846_v20  ;;  %v859_v46 = vld [vmem:[%s2029_s8 + $0x168] sm:$0xff]  ;;  %v860_v48 = vld [vmem:[%s2029_s8 + $0x170] sm:$0xff]  ;;  %v861_v50 = vld [vmem:[%s2029_s8 + $0x178] sm:$0xff] }
  0x28   : > { %1710 = vmatprep.mubr.msk.f32.mxu1 %vm245_vm0, %v541_v19 }
  0x2a   : > { %1739 = vmatmul.mubr.msk.f32.vlgmr.msra.gmra.mrb[8].mxu0 %vm245_vm0, %v847_v22 }
  0x2b   : > { %1711 = vmatmul.mubr.msk.f32.vlgmr.msra.gmra.mrb[8].mxu1 %vm245_vm0, %v542_v21  ;;  %1741 = vmatprep.mubr.msk.f32.mxu0 %vm245_vm0, %v848_v24 }
  0x2c   : > { %1713 = vmatprep.mubr.msk.f32.mxu1 %vm245_vm0, %v543_v23 }
  0x2e   : > { %1742 = vmatmul.mubr.msk.f32.gmra.mrb[10].mxu0 %vm245_vm0, %v849_v26 }
  0x2f   : > { %1714 = vmatmul.mubr.msk.f32.gmra.mrb[10].mxu1 %vm245_vm0, %v544_v25  ;;  %1744 = vmatprep.mubr.msk.f32.mxu0 %vm245_vm0, %v850_v28 }
  0x30   : > { %1716 = vmatprep.mubr.msk.f32.mxu1 %vm245_vm0, %v545_v27 }
  0x32   : > { %1745 = vmatmul.mubr.msk.f32.gmra.mrb[12].mxu0 %vm245_vm0, %v851_v30 }
  0x33   : > { %1717 = vmatmul.mubr.msk.f32.gmra.mrb[12].mxu1 %vm245_vm0, %v546_v29  ;;  %1747 = vmatprep.mubr.msk.f32.mxu0 %vm245_vm0, %v852_v32 }
  0x34   : > { %1719 = vmatprep.mubr.msk.f32.mxu1 %vm245_vm0, %v547_v31 }
  0x36   : > { %1748 = vmatmul.mubr.msk.f32.gmra.mrb[14].mxu0 %vm245_vm0, %v853_v34 }
  0x37   : > { %1720 = vmatmul.mubr.msk.f32.gmra.mrb[14].mxu1 %vm245_vm0, %v548_v33  ;;  %1750 = vmatprep.mubr.msk.f32.mxu0 %vm245_vm0, %v854_v36 }
  0x38   : > { %1722 = vmatprep.mubr.msk.f32.mxu1 %vm245_vm0, %v549_v35 }
  0x3a   : > { %1751 = vmatmul.mubr.msk.f32.gmra.mrb[16].mxu0 %vm245_vm0, %v855_v38 }
  0x3b   : > { %1723 = vmatmul.mubr.msk.f32.gmra.mrb[16].mxu1 %vm245_vm0, %v550_v37  ;;  %1753 = vmatprep.mubr.msk.f32.mxu0 %vm245_vm0, %v856_v40 }
  0x3c   : > { %1725 = vmatprep.mubr.msk.f32.mxu1 %vm245_vm0, %v551_v39 }
  0x3e   : > { %1754 = vmatmul.mubr.msk.f32.gmra.mrb[18].mxu0 %vm245_vm0, %v857_v42 }
  0x3f   : > { %1726 = vmatmul.mubr.msk.f32.gmra.mrb[18].mxu1 %vm245_vm0, %v552_v41  ;;  %1756 = vmatprep.mubr.msk.f32.mxu0 %vm245_vm0, %v858_v44 }
  0x40   : > { %1728 = vmatprep.mubr.msk.f32.mxu1 %vm245_vm0, %v553_v43 }
  0x42   : > { %1757 = vmatmul.mubr.msk.f32.gmra.mrb[20].mxu0 %vm245_vm0, %v859_v46 }
  0x43   : > { %1729 = vmatmul.mubr.msk.f32.gmra.mrb[20].mxu1 %vm245_vm0, %v554_v45  ;;  %1759 = vmatprep.mubr.msk.f32.mxu0 %vm245_vm0, %v860_v48 }
  0x44   : > { %1731 = vmatprep.mubr.msk.f32.mxu1 %vm245_vm0, %v555_v47 }
  0x46   : > { %1760 = vmatmul.mubr.msk.f32.gmra.mrb[22].mxu0 %vm245_vm0, %v861_v50 }
  0x47   : > { %1732 = vmatmul.mubr.msk.f32.gmra.mrb[22].mxu1 %vm245_vm0, %v556_v49 }
  0xed   : > { %v1684_v52 = vpop.f32.mrb[0].mxu0 }
  0xee   : > { %v1696_v53 = vpop.f32.mrb[0].mxu1  ;;  %v366_v54 = vadd.f32 %v1684_v52, %v2130_v51  ;;  %v360_v56 = vpop.f32.mrb[1].mxu0 }
  0xef   : > { %v406_v55 = vadd.f32 %v1696_v53, %v2130_v51  ;;  %v400_v57 = vpop.f32.mrb[1].mxu1  ;;  %v361_v58 = vadd.f32 %v2130_v51, %v360_v56 }
  0xf0   : > { %v440_v60 = vmax.f32 %v366_v54, 0.0  ;;  %v401_v63 = vadd.f32 %v2130_v51, %v400_v57 }
  0xf1   : > { %v448_v61 = vmax.f32 %v406_v55, 0.0  ;;  %v439_v62 = vmax.f32 %v361_v58, 0.0  ;;  %v1687_v0 = vpop.f32.mrb[2].mxu0 }
  0xf2   : > { %v1699_v1 = vpop.f32.mrb[2].mxu1  ;;  %v376_v2 = vadd.f32 %v1687_v0, %v2130_v51  ;;  %v370_v3 = vpop.f32.mrb[3].mxu0  ;;  %v460_v6 = vmul.f32 %v2138_v59, %v440_v60  ;;  %v447_v10 = vmax.f32 %v401_v63, 0.0 }
  0xf3   : > { %v468_v4 = vmul.f32 %v2138_v59, %v448_v61  ;;  %v416_v5 = vadd.f32 %v1699_v1, %v2130_v51  ;;  %v410_v7 = vpop.f32.mrb[3].mxu1  ;;  %v371_v13 = vadd.f32 %v2130_v51, %v370_v3  ;;  %v459_v16 = vmul.f32 %v2138_v59, %v439_v62 }
  0xf4   : > { %v442_v8 = vmax.f32 %v376_v2, 0.0  ;;  %477 = vadd.xlane.f32.xlu0 %v460_v6  ;;  %v411_v14 = vadd.f32 %v2130_v51, %v410_v7  ;;  %v467_v26 = vmul.f32 %v2138_v59, %v447_v10 }
  0xf5   : > { %493 = vadd.xlane.f32.xlu1 %v468_v4  ;;  %v450_v9 = vmax.f32 %v416_v5, 0.0  ;;  %v1690_v11 = vpop.f32.mrb[4].mxu0  ;;  %v441_v24 = vmax.f32 %v371_v13, 0.0 }
  0xf6   : > { %v1702_v12 = vpop.f32.mrb[4].mxu1  ;;  %v462_v15 = vmul.f32 %v2138_v59, %v442_v8  ;;  %v380_v17 = vpop.f32.mrb[5].mxu0  ;;  %v386_v19 = vadd.f32 %v1690_v11, %v2130_v51  ;;  %v449_v25 = vmax.f32 %v411_v14, 0.0 }
  0xf7   : > { %v420_v18 = vpop.f32.mrb[5].mxu1  ;;  %v470_v20 = vmul.f32 %v2138_v59, %v450_v9  ;;  %v381_v21 = vadd.f32 %v2130_v51, %v380_v17  ;;  %v426_v29 = vadd.f32 %v1702_v12, %v2130_v51  ;;  %v461_v35 = vmul.f32 %v2138_v59, %v441_v24 }
  0xf8   : > { %475 = vadd.xlane.f32.xlu0 %v459_v16  ;;  %v444_v30 = vmax.f32 %v386_v19, 0.0  ;;  %v421_v32 = vadd.f32 %v2130_v51, %v420_v18  ;;  %v469_v36 = vmul.f32 %v2138_v59, %v449_v25 }
  0xf9   : > { %481 = vadd.xlane.f32.xlu1 %v462_v15  ;;  %v1693_v22 = vpop.f32.mrb[6].mxu0  ;;  %v443_v31 = vmax.f32 %v381_v21, 0.0  ;;  %v452_v39 = vmax.f32 %v426_v29, 0.0 }
  0xfa   : > { %v1705_v23 = vpop.f32.mrb[6].mxu1  ;;  %v390_v27 = vpop.f32.mrb[7].mxu0  ;;  %v396_v40 = vadd.f32 %v1693_v22, %v2130_v51  ;;  %v451_v41 = vmax.f32 %v421_v32, 0.0  ;;  %v464_v43 = vmul.f32 %v2138_v59, %v444_v30 }
  0xfb   : > { %v430_v28 = vpop.f32.mrb[7].mxu1  ;;  %v391_v42 = vadd.f32 %v2130_v51, %v390_v27  ;;  %v463_v44 = vmul.f32 %v2138_v59, %v443_v31  ;;  %v436_v49 = vadd.f32 %v1705_v23, %v2130_v51  ;;  %v472_v50 = vmul.f32 %v2138_v59, %v452_v39 }
  0xfc   : > { %491 = vadd.xlane.f32.xlu0 %v467_v26  ;;  %v446_v52 = vmax.f32 %v396_v40, 0.0  ;;  %v431_v54 = vadd.f32 %v2130_v51, %v430_v28  ;;  %v471_v55 = vmul.f32 %v2138_v59, %v451_v41 }
  0xfd   : > { %497 = vadd.xlane.f32.xlu1 %v470_v20  ;;  %v1740_v34 = vpop.f32.mrb[8].mxu0  ;;  %v445_v53 = vmax.f32 %v391_v42, 0.0  ;;  %v454_v63 = vmax.f32 %v436_v49, 0.0 }
  0xfe   : > { %v1712_v33 = vpop.f32.mrb[8].mxu1  ;;  %v976_v38 = vpop.f32.mrb[9].mxu0  ;;  %v982_v60 = vadd.f32 %v1740_v34, %v2130_v51  ;;  %v453_v2 = vmax.f32 %v431_v54, 0.0  ;;  %v466_v3 = vmul.f32 %v2138_v59, %v446_v52 }
  0xff   : > { %v671_v37 = vpop.f32.mrb[9].mxu1  ;;  %v677_v58 = vadd.f32 %v1712_v33, %v2130_v51  ;;  %v977_v1 = vadd.f32 %v2130_v51, %v976_v38  ;;  %v465_v4 = vmul.f32 %v2138_v59, %v445_v53  ;;  %v474_v13 = vmul.f32 %v2138_v59, %v454_v63 }
 0x100   : > { %495 = vadd.xlane.f32.xlu0 %v469_v36  ;;  %v672_v0 = vadd.f32 %v2130_v51, %v671_v37  ;;  %v1056_v8 = vmax.f32 %v982_v60, 0.0  ;;  %v473_v14 = vmul.f32 %v2138_v59, %v453_v2 }
 0x101   : > { %479 = vadd.xlane.f32.xlu1 %v461_v35  ;;  %v1743_v46 = vpop.f32.mrb[10].mxu0  ;;  %v751_v7 = vmax.f32 %v677_v58, 0.0  ;;  %v1055_v12 = vmax.f32 %v977_v1, 0.0 }
 0x102   : > { %v1715_v45 = vpop.f32.mrb[10].mxu1  ;;  %v986_v48 = vpop.f32.mrb[11].mxu0  ;;  %v750_v11 = vmax.f32 %v672_v0, 0.0  ;;  %v992_v16 = vadd.f32 %v1743_v46, %v2130_v51  ;;  %v1072_v22 = vmul.f32 %v2138_v59, %v1056_v8 }
 0x103   : > { %v681_v47 = vpop.f32.mrb[11].mxu1  ;;  %v687_v15 = vadd.f32 %v1715_v45, %v2130_v51  ;;  %v2193_v18 = vadd.f32 %v2130_v51, %v986_v48  ;;  %v767_v21 = vmul.f32 %v2138_v59, %v751_v7  ;;  %v1071_v28 = vmul.f32 %v2138_v59, %v1055_v12 }
 0x104   : > { %483 = vadd.xlane.f32.xlu0 %v463_v44  ;;  %v682_v17 = vadd.f32 %v2130_v51, %v681_v47  ;;  %v766_v27 = vmul.f32 %v2138_v59, %v750_v11  ;;  %v1058_v32 = vmax.f32 %v992_v16, 0.0 }
 0x105   : > { %485 = vadd.xlane.f32.xlu1 %v464_v43  ;;  %v2167_v57 = vpop.f32.mrb[12].mxu0  ;;  %v753_v31 = vmax.f32 %v687_v15, 0.0  ;;  %v1057_v36 = vmax.f32 %v2193_v18, 0.0 }
 0x106   : > { %v2165_v56 = vpop.f32.mrb[12].mxu1  ;;  %v2173_v62 = vpop.f32.mrb[13].mxu0  ;;  %v752_v35 = vmax.f32 %v682_v17, 0.0  ;;  %v1002_v58 = vadd.f32 %v2167_v57, %v2130_v51  ;;  %v1074_v60 = vmul.f32 %v2138_v59, %v1058_v32 }
 0x107   : > { %v2171_v61 = vpop.f32.mrb[13].mxu1  ;;  %v697_v52 = vadd.f32 %v2165_v56, %v2130_v51  ;;  %v769_v53 = vmul.f32 %v2138_v59, %v753_v31 }
 0x108   : > { %499 = vadd.xlane.f32.xlu0 %v471_v55  ;;  %v692_v15 = vadd.f32 %v2130_v51, %v2171_v61  ;;  %v768_v16 = vmul.f32 %v2138_v59, %v752_v35 }
 0x109   : > { %501 = vadd.xlane.f32.xlu1 %v472_v50  ;;  %v2181_v6 = vpop.f32.mrb[14].mxu0 }
 0x10a   : > { %v2179_v5 = vpop.f32.mrb[14].mxu1  ;;  %v2185_v10 = vpop.f32.mrb[15].mxu0 }
 0x10b   : > { %v2183_v9 = vpop.f32.mrb[15].mxu1 }
 0x10c   : > { %487 = vadd.xlane.f32.xlu0 %v465_v4 }
 0x10d   : > { %489 = vadd.xlane.f32.xlu1 %v466_v3  ;;  %v1752_v20 = vpop.f32.mrb[16].mxu0 }
 0x10e   : > { %v1724_v19 = vpop.f32.mrb[16].mxu1  ;;  %v1022_v25 = vadd.f32 %v1752_v20, %v2130_v51  ;;  %v1016_v26 = vpop.f32.mrb[17].mxu0  ;;  %v1073_v20 = vmul.f32 %v2138_v59, %v1057_v36 }
 0x10f   : > { %v717_v23 = vadd.f32 %v1724_v19, %v2130_v51  ;;  %v711_v24 = vpop.f32.mrb[17].mxu1  ;;  %v1017_v30 = vadd.f32 %v2130_v51, %v1016_v26  ;;  %v997_v19 = vadd.f32 %v2130_v51, %v2173_v62 }
 0x110   : > { %v712_v29 = vadd.f32 %v2130_v51, %v711_v24  ;;  %503 = vadd.xlane.f32.xlu0 %v473_v14  ;;  %v1064_v34 = vmax.f32 %v1022_v25, 0.0 }
 0x111   : > { %505 = vadd.xlane.f32.xlu1 %v474_v13  ;;  %v759_v33 = vmax.f32 %v717_v23, 0.0  ;;  %v1063_v38 = vmax.f32 %v1017_v30, 0.0  ;;  %v1755_v40 = vpop.f32.mrb[18].mxu0 }
 0x112   : > { %v758_v37 = vmax.f32 %v712_v29, 0.0  ;;  %v1727_v39 = vpop.f32.mrb[18].mxu1  ;;  %v1032_v44 = vadd.f32 %v1755_v40, %v2130_v51  ;;  %v1026_v45 = vpop.f32.mrb[19].mxu0  ;;  %v2210_v46 = vmul.f32 %v2138_v59, %v1064_v34  ;;  %v754_v34 = vmax.f32 %v692_v15, 0.0 }
 0x113   : > { %v727_v41 = vadd.f32 %v1727_v39, %v2130_v51  ;;  %v721_v42 = vpop.f32.mrb[19].mxu1  ;;  %v2206_v43 = vmul.f32 %v2138_v59, %v759_v33  ;;  %v1027_v49 = vadd.f32 %v2130_v51, %v1026_v45  ;;  %v2218_v50 = vmul.f32 %v2138_v59, %v1063_v38 }
 0x114   : > { %v722_v47 = vadd.f32 %v2130_v51, %v721_v42  ;;  %v2214_v48 = vmul.f32 %v2138_v59, %v758_v37  ;;  %782 = vadd.xlane.f32.xlu0 %v766_v27  ;;  %v1066_v55 = vmax.f32 %v1032_v44, 0.0  ;;  %v755_v33 = vmax.f32 %v697_v52, 0.0 }
 0x115   : > { %784 = vadd.xlane.f32.xlu1 %v767_v21  ;;  %v761_v54 = vmax.f32 %v727_v41, 0.0  ;;  %v1065_v0 = vmax.f32 %v1027_v49, 0.0  ;;  %v1758_v2 = vpop.f32.mrb[20].mxu0  ;;  %v1060_v41 = vmax.f32 %v1002_v58, 0.0  ;;  %v707_v42 = vadd.f32 %v2179_v5, %v2130_v51 }
 0x116   : > { %v760_v63 = vmax.f32 %v722_v47, 0.0  ;;  %v1730_v1 = vpop.f32.mrb[20].mxu1  ;;  %v1042_v56 = vadd.f32 %v1758_v2, %v2130_v51  ;;  %v1036_v8 = vpop.f32.mrb[21].mxu0  ;;  %v2232_v11 = vmul.f32 %v2138_v59, %v1066_v55  ;;  %v1059_v47 = vmax.f32 %v997_v19, 0.0 }
 0x117   : > { %v737_v3 = vadd.f32 %v1730_v1, %v2130_v51  ;;  %v731_v4 = vpop.f32.mrb[21].mxu1  ;;  %v2228_v7 = vmul.f32 %v2138_v59, %v761_v54  ;;  %v1037_v13 = vadd.f32 %v2130_v51, %v1036_v8  ;;  %v2240_v14 = vmul.f32 %v2138_v59, %v1065_v0 }
 0x118   : > { %v732_v57 = vadd.f32 %v2130_v51, %v731_v4  ;;  %v2236_v12 = vmul.f32 %v2138_v59, %v760_v63  ;;  %1087 = vadd.xlane.f32.xlu0 %v1071_v28  ;;  %v1068_v18 = vmax.f32 %v1042_v56, 0.0  ;;  %v702_v49 = vadd.f32 %v2130_v51, %v2183_v9 }
 0x119   : > { %1089 = vadd.xlane.f32.xlu1 %v1072_v22  ;;  %v763_v17 = vmax.f32 %v737_v3, 0.0  ;;  %v1067_v23 = vmax.f32 %v1037_v13, 0.0  ;;  %v1761_v25 = vpop.f32.mrb[22].mxu0  ;;  %v771_v52 = vmul.f32 %v2138_v59, %v755_v33  ;;  %v1012_v54 = vadd.f32 %v2181_v6, %v2130_v51 }
 0x11a   : > { %v762_v21 = vmax.f32 %v732_v57, 0.0  ;;  %v1733_v24 = vpop.f32.mrb[22].mxu1  ;;  %v1052_v61 = vadd.f32 %v1761_v25, %v2130_v51  ;;  %v1046_v28 = vpop.f32.mrb[23].mxu0  ;;  %v1084_v29 = vmul.f32 %v2138_v59, %v1068_v18  ;;  %v1076_v55 = vmul.f32 %v2138_v59, %v1060_v41 }
 0x11b   : > { %v747_v26 = vadd.f32 %v1733_v24, %v2130_v51  ;;  %v741_v22 = vpop.f32.mrb[23].mxu1  ;;  %v779_v27 = vmul.f32 %v2138_v59, %v763_v17  ;;  %v1047_v31 = vadd.f32 %v2130_v51, %v1046_v28  ;;  %v1083_v32 = vmul.f32 %v2138_v59, %v1067_v23 }
 0x11c   : > { %v742_v30 = vadd.f32 %v2130_v51, %v741_v22  ;;  %v778_v62 = vmul.f32 %v2138_v59, %v762_v21  ;;  %786 = vadd.xlane.f32.xlu0 %v768_v16  ;;  %v1070_v36 = vmax.f32 %v1052_v61, 0.0  ;;  %v757_v5 = vmax.f32 %v707_v42, 0.0 }
 0x11d   : > { %788 = vadd.xlane.f32.xlu1 %v769_v53  ;;  %v765_v35 = vmax.f32 %v747_v26, 0.0  ;;  %v1069_v38 = vmax.f32 %v1047_v31, 0.0  ;;  %v770_v53 = vmul.f32 %v2138_v59, %v754_v34  ;;  %v756_v58 = vmax.f32 %v702_v49, 0.0 }
 0x11e   : > { %v764_v37 = vmax.f32 %v742_v30, 0.0  ;;  %v1086_v40 = vmul.f32 %v2138_v59, %v1070_v36  ;;  %v1075_v63 = vmul.f32 %v2138_v59, %v1059_v47  ;;  %v1062_v0 = vmax.f32 %v1012_v54, 0.0 }
 0x11f   : > { %v781_v39 = vmul.f32 %v2138_v59, %v765_v35  ;;  %v1085_v45 = vmul.f32 %v2138_v59, %v1069_v38  ;;  %v773_v1 = vmul.f32 %v2138_v59, %v757_v5  ;;  %v772_v2 = vmul.f32 %v2138_v59, %v756_v58 }
 0x120   : > { %v780_v44 = vmul.f32 %v2138_v59, %v764_v37  ;;  %1091 = vadd.xlane.f32.xlu0 %v1073_v20  ;;  %v1078_v6 = vmul.f32 %v2138_v59, %v1062_v0 }
 0x121   : > { %1093 = vadd.xlane.f32.xlu1 %v1074_v60  ;;  %v1007_v60 = vadd.f32 %v2130_v51, %v2185_v10  ;;  %v2285_v51 = vstv %s224_s13 }
 0x123   : > { %v1061_v9 = vmax.f32 %v1007_v60, 0.0 }
 0x124   : > { %790 = vadd.xlane.f32.xlu0 %v770_v53 }
 0x125   : > { %792 = vadd.xlane.f32.xlu1 %v771_v52  ;;  %v1077_v3 = vmul.f32 %v2138_v59, %v1061_v9 }
 0x128   : > { %1095 = vadd.xlane.f32.xlu0 %v1075_v63 }
 0x129   : > { %1097 = vadd.xlane.f32.xlu1 %v1076_v55 }
 0x12c   : > { %794 = vadd.xlane.f32.xlu0 %v772_v2 }
 0x12d   : > { %796 = vadd.xlane.f32.xlu1 %v773_v1 }
 0x130   : > { %1099 = vadd.xlane.f32.xlu0 %v1077_v3 }
 0x131   : > { %1101 = vadd.xlane.f32.xlu1 %v1078_v6 }
 0x134   : > { %798 = vadd.xlane.f32.xlu0 %v2214_v48 }
 0x135   : > { %800 = vadd.xlane.f32.xlu1 %v2206_v43 }
 0x138   : > { %1103 = vadd.xlane.f32.xlu0 %v2218_v50 }
 0x139   : > { %1105 = vadd.xlane.f32.xlu1 %v2210_v46 }
 0x13c   : > { %802 = vadd.xlane.f32.xlu0 %v2236_v12 }
 0x13d   : > { %804 = vadd.xlane.f32.xlu1 %v2228_v7 }
 0x140   : > { %1107 = vadd.xlane.f32.xlu0 %v2240_v14 }
 0x141   : > { %1109 = vadd.xlane.f32.xlu1 %v2232_v11 }
 0x144   : > { %806 = vadd.xlane.f32.xlu0 %v778_v62 }
 0x145   : > { %808 = vadd.xlane.f32.xlu1 %v779_v27 }
 0x148   : > { %1111 = vadd.xlane.f32.xlu0 %v1083_v32 }
 0x149   : > { %1113 = vadd.xlane.f32.xlu1 %v1084_v29 }
 0x14c   : > { %810 = vadd.xlane.f32.xlu0 %v780_v44 }
 0x14d   : > { %812 = vadd.xlane.f32.xlu1 %v781_v39 }
 0x150   : > { %1115 = vadd.xlane.f32.xlu0 %v1085_v45 }
 0x151   : > { %1117 = vadd.xlane.f32.xlu1 %v1086_v40 }
 0x181   : > { %v478_v10 = vpop.xlane.xlu0 %477 }
 0x182   : > { %v494_v59 = vpop.xlane.xlu1 %493  ;;  %v509_v46 = vadd.f32 %v2285_v51, %v478_v10 }
 0x183   : > { %v517_v43 = vadd.f32 %v2285_v51, %v494_v59 }
 0x184   : > { %526 = vst.msk [vmem:[%s2289_s16 + $0x8] sm:$0xff] %vm524_vm1, %v509_v46 }
 0x185   : > { %534 = vst.msk [vmem:[%s2289_s16 + $0x48] sm:$0xff] %vm524_vm1, %v517_v43  ;;  %v476_v50 = vpop.xlane.xlu0 %475 }
 0x186   : > { %v482_v48 = vpop.xlane.xlu1 %481  ;;  %v508_v7 = vadd.f32 %v2285_v51, %v476_v50 }
 0x187   : > { %v511_v4 = vadd.f32 %v2285_v51, %v482_v48 }
 0x188   : > { %525 = vst.msk [vmem:[%s2289_s16] sm:$0xff] %vm524_vm1, %v508_v7 }
 0x189   : > { %528 = vst.msk [vmem:[%s2289_s16 + $0x18] sm:$0xff] %vm524_vm1, %v511_v4  ;;  %v492_v8 = vpop.xlane.xlu0 %491 }
 0x18a   : > { %v498_v56 = vpop.xlane.xlu1 %497  ;;  %v516_v57 = vadd.f32 %v2285_v51, %v492_v8 }
 0x18b   : > { %v519_v11 = vadd.f32 %v2285_v51, %v498_v56 }
 0x18c   : > { %533 = vst.msk [vmem:[%s2289_s16 + $0x40] sm:$0xff] %vm524_vm1, %v516_v57 }
 0x18d   : > { %536 = vst.msk [vmem:[%s2289_s16 + $0x58] sm:$0xff] %vm524_vm1, %v519_v11  ;;  %v496_v13 = vpop.xlane.xlu0 %495 }
 0x18e   : > { %v480_v12 = vpop.xlane.xlu1 %479  ;;  %v518_v15 = vadd.f32 %v2285_v51, %v496_v13 }
 0x18f   : > { %v510_v14 = vadd.f32 %v2285_v51, %v480_v12 }
 0x190   : > { %535 = vst.msk [vmem:[%s2289_s16 + $0x50] sm:$0xff] %vm524_vm1, %v518_v15 }
 0x191   : > { %527 = vst.msk [vmem:[%s2289_s16 + $0x10] sm:$0xff] %vm524_vm1, %v510_v14  ;;  %v484_v17 = vpop.xlane.xlu0 %483 }
 0x192   : > { %v486_v16 = vpop.xlane.xlu1 %485  ;;  %v512_v19 = vadd.f32 %v2285_v51, %v484_v17 }
 0x193   : > { %v513_v18 = vadd.f32 %v2285_v51, %v486_v16 }
 0x194   : > { %529 = vst.msk [vmem:[%s2289_s16 + $0x20] sm:$0xff] %vm524_vm1, %v512_v19 }
 0x195   : > { %530 = vst.msk [vmem:[%s2289_s16 + $0x28] sm:$0xff] %vm524_vm1, %v513_v18  ;;  %v500_v21 = vpop.xlane.xlu0 %499 }
 0x196   : > { %v502_v20 = vpop.xlane.xlu1 %501  ;;  %v520_v24 = vadd.f32 %v2285_v51, %v500_v21 }
 0x197   : > { %v521_v23 = vadd.f32 %v2285_v51, %v502_v20 }
 0x198   : > { %537 = vst.msk [vmem:[%s2289_s16 + $0x60] sm:$0xff] %vm524_vm1, %v520_v24 }
 0x199   : > { %538 = vst.msk [vmem:[%s2289_s16 + $0x68] sm:$0xff] %vm524_vm1, %v521_v23  ;;  %v488_v26 = vpop.xlane.xlu0 %487 }
 0x19a   : > { %v490_v25 = vpop.xlane.xlu1 %489  ;;  %v514_v27 = vadd.f32 %v2285_v51, %v488_v26 }
 0x19b   : > { %v515_v22 = vadd.f32 %v2285_v51, %v490_v25 }
 0x19c   : > { %531 = vst.msk [vmem:[%s2289_s16 + $0x30] sm:$0xff] %vm524_vm1, %v514_v27 }
 0x19d   : > { %532 = vst.msk [vmem:[%s2289_s16 + $0x38] sm:$0xff] %vm524_vm1, %v515_v22  ;;  %v504_v28 = vpop.xlane.xlu0 %503 }
 0x19e   : > { %v506_v61 = vpop.xlane.xlu1 %505  ;;  %v522_v30 = vadd.f32 %v2285_v51, %v504_v28 }
 0x19f   : > { %v523_v29 = vadd.f32 %v2285_v51, %v506_v61 }
 0x1a0   : > { %539 = vst.msk [vmem:[%s2289_s16 + $0x70] sm:$0xff] %vm524_vm1, %v522_v30 }
 0x1a1   : > { %540 = vst.msk [vmem:[%s2289_s16 + $0x78] sm:$0xff] %vm524_vm1, %v523_v29  ;;  %v783_v31 = vpop.xlane.xlu0 %782 }
 0x1a2   : > { %v785_v62 = vpop.xlane.xlu1 %784  ;;  %v814_v33 = vadd.f32 %v783_v31, %v2285_v51 }
 0x1a3   : > { %v815_v32 = vadd.f32 %v785_v62, %v2285_v51 }
 0x1a4   : > { %830 = vst.msk [vmem:[%s2289_s16 + $0x80] sm:$0xff] %vm524_vm1, %v814_v33 }
 0x1a5   : > { %831 = vst.msk [vmem:[%s2289_s16 + $0x88] sm:$0xff] %vm524_vm1, %v815_v32  ;;  %v1088_v35 = vpop.xlane.xlu0 %1087 }
 0x1a6   : > { %v1090_v34 = vpop.xlane.xlu1 %1089  ;;  %v1119_v37 = vadd.f32 %v1088_v35, %v2285_v51 }
 0x1a7   : > { %v1120_v36 = vadd.f32 %v1090_v34, %v2285_v51 }
 0x1a8   : > { %1135 = vst.msk [vmem:[%s2289_s16 + $0x100] sm:$0xff] %vm524_vm1, %v1119_v37 }
 0x1a9   : > { %1136 = vst.msk [vmem:[%s2289_s16 + $0x108] sm:$0xff] %vm524_vm1, %v1120_v36  ;;  %v787_v39 = vpop.xlane.xlu0 %786 }
 0x1aa   : > { %v789_v38 = vpop.xlane.xlu1 %788  ;;  %v816_v41 = vadd.f32 %v787_v39, %v2285_v51 }
 0x1ab   : > { %v817_v40 = vadd.f32 %v789_v38, %v2285_v51 }
 0x1ac   : > { %832 = vst.msk [vmem:[%s2289_s16 + $0x90] sm:$0xff] %vm524_vm1, %v816_v41 }
 0x1ad   : > { %833 = vst.msk [vmem:[%s2289_s16 + $0x98] sm:$0xff] %vm524_vm1, %v817_v40  ;;  %v1092_v44 = vpop.xlane.xlu0 %1091 }
 0x1ae   : > { %v1094_v42 = vpop.xlane.xlu1 %1093  ;;  %v1121_v47 = vadd.f32 %v1092_v44, %v2285_v51 }
 0x1af   : > { %v1122_v45 = vadd.f32 %v1094_v42, %v2285_v51 }
 0x1b0   : > { %1137 = vst.msk [vmem:[%s2289_s16 + $0x110] sm:$0xff] %vm524_vm1, %v1121_v47 }
 0x1b1   : > { %1138 = vst.msk [vmem:[%s2289_s16 + $0x118] sm:$0xff] %vm524_vm1, %v1122_v45  ;;  %v791_v52 = vpop.xlane.xlu0 %790 }
 0x1b2   : > { %v793_v49 = vpop.xlane.xlu1 %792  ;;  %v818_v54 = vadd.f32 %v791_v52, %v2285_v51 }
 0x1b3   : > { %v819_v53 = vadd.f32 %v793_v49, %v2285_v51 }
 0x1b4   : > { %834 = vst.msk [vmem:[%s2289_s16 + $0xa0] sm:$0xff] %vm524_vm1, %v818_v54 }
 0x1b5   : > { %835 = vst.msk [vmem:[%s2289_s16 + $0xa8] sm:$0xff] %vm524_vm1, %v819_v53  ;;  %v1096_v5 = vpop.xlane.xlu0 %1095 }
 0x1b6   : > { %v1098_v55 = vpop.xlane.xlu1 %1097  ;;  %v1123_v60 = vadd.f32 %v1096_v5, %v2285_v51 }
 0x1b7   : > { %v1124_v58 = vadd.f32 %v1098_v55, %v2285_v51 }
 0x1b8   : > { %1139 = vst.msk [vmem:[%s2289_s16 + $0x120] sm:$0xff] %vm524_vm1, %v1123_v60 }
 0x1b9   : > { %1140 = vst.msk [vmem:[%s2289_s16 + $0x128] sm:$0xff] %vm524_vm1, %v1124_v58  ;;  %v795_v0 = vpop.xlane.xlu0 %794 }
 0x1ba   : > { %v797_v63 = vpop.xlane.xlu1 %796  ;;  %v820_v1 = vadd.f32 %v795_v0, %v2285_v51 }
 0x1bb   : > { %v821_v9 = vadd.f32 %v797_v63, %v2285_v51 }
 0x1bc   : > { %836 = vst.msk [vmem:[%s2289_s16 + $0xb0] sm:$0xff] %vm524_vm1, %v820_v1 }
 0x1bd   : > { %837 = vst.msk [vmem:[%s2289_s16 + $0xb8] sm:$0xff] %vm524_vm1, %v821_v9  ;;  %v1100_v6 = vpop.xlane.xlu0 %1099 }
 0x1be   : > { %v1102_v2 = vpop.xlane.xlu1 %1101  ;;  %v1125_v59 = vadd.f32 %v1100_v6, %v2285_v51 }
 0x1bf   : > { %v1126_v3 = vadd.f32 %v1102_v2, %v2285_v51 }
 0x1c0   : > { %1141 = vst.msk [vmem:[%s2289_s16 + $0x130] sm:$0xff] %vm524_vm1, %v1125_v59 }
 0x1c1   : > { %1142 = vst.msk [vmem:[%s2289_s16 + $0x138] sm:$0xff] %vm524_vm1, %v1126_v3  ;;  %v799_v43 = vpop.xlane.xlu0 %798 }
 0x1c2   : > { %v801_v10 = vpop.xlane.xlu1 %800  ;;  %v822_v48 = vadd.f32 %v799_v43, %v2285_v51 }
 0x1c3   : > { %v823_v46 = vadd.f32 %v801_v10, %v2285_v51 }
 0x1c4   : > { %838 = vst.msk [vmem:[%s2289_s16 + $0xc0] sm:$0xff] %vm524_vm1, %v822_v48 }
 0x1c5   : > { %839 = vst.msk [vmem:[%s2289_s16 + $0xc8] sm:$0xff] %vm524_vm1, %v823_v46  ;;  %v1104_v4 = vpop.xlane.xlu0 %1103 }
 0x1c6   : > { %v1106_v50 = vpop.xlane.xlu1 %1105  ;;  %v1127_v56 = vadd.f32 %v1104_v4, %v2285_v51 }
 0x1c7   : > { %v1128_v7 = vadd.f32 %v1106_v50, %v2285_v51 }
 0x1c8   : > { %1143 = vst.msk [vmem:[%s2289_s16 + $0x140] sm:$0xff] %vm524_vm1, %v1127_v56 }
 0x1c9   : > { %1144 = vst.msk [vmem:[%s2289_s16 + $0x148] sm:$0xff] %vm524_vm1, %v1128_v7  ;;  %v803_v11 = vpop.xlane.xlu0 %802 }
 0x1ca   : > { %v805_v8 = vpop.xlane.xlu1 %804  ;;  %v824_v12 = vadd.f32 %v803_v11, %v2285_v51 }
 0x1cb   : > { %v825_v57 = vadd.f32 %v805_v8, %v2285_v51 }
 0x1cc   : > { %840 = vst.msk [vmem:[%s2289_s16 + $0xd0] sm:$0xff] %vm524_vm1, %v824_v12 }
 0x1cd   : > { %841 = vst.msk [vmem:[%s2289_s16 + $0xd8] sm:$0xff] %vm524_vm1, %v825_v57  ;;  %v1108_v14 = vpop.xlane.xlu0 %1107 }
 0x1ce   : > { %v1110_v13 = vpop.xlane.xlu1 %1109  ;;  %v1129_v16 = vadd.f32 %v1108_v14, %v2285_v51 }
 0x1cf   : > { %v1130_v15 = vadd.f32 %v1110_v13, %v2285_v51 }
 0x1d0   : > { %1145 = vst.msk [vmem:[%s2289_s16 + $0x150] sm:$0xff] %vm524_vm1, %v1129_v16 }
 0x1d1   : > { %1146 = vst.msk [vmem:[%s2289_s16 + $0x158] sm:$0xff] %vm524_vm1, %v1130_v15  ;;  %v807_v18 = vpop.xlane.xlu0 %806 }
 0x1d2   : > { %v809_v17 = vpop.xlane.xlu1 %808  ;;  %v826_v20 = vadd.f32 %v807_v18, %v2285_v51 }
 0x1d3   : > { %v827_v19 = vadd.f32 %v809_v17, %v2285_v51 }
 0x1d4   : > { %842 = vst.msk [vmem:[%s2289_s16 + $0xe0] sm:$0xff] %vm524_vm1, %v826_v20 }
 0x1d5   : > { %843 = vst.msk [vmem:[%s2289_s16 + $0xe8] sm:$0xff] %vm524_vm1, %v827_v19  ;;  %v1112_v23 = vpop.xlane.xlu0 %1111 }
 0x1d6   : > { %v1114_v21 = vpop.xlane.xlu1 %1113  ;;  %v1131_v25 = vadd.f32 %v1112_v23, %v2285_v51 }
 0x1d7   : > { %v1132_v24 = vadd.f32 %v1114_v21, %v2285_v51 }
 0x1d8   : > { %1147 = vst.msk [vmem:[%s2289_s16 + $0x160] sm:$0xff] %vm524_vm1, %v1131_v25 }
 0x1d9   : > { %1148 = vst.msk [vmem:[%s2289_s16 + $0x168] sm:$0xff] %vm524_vm1, %v1132_v24  ;;  %v811_v22 = vpop.xlane.xlu0 %810 }
 0x1da   : > { %v813_v26 = vpop.xlane.xlu1 %812  ;;  %v828_v61 = vadd.f32 %v811_v22, %v2285_v51 }
 0x1db   : > { %v829_v27 = vadd.f32 %v813_v26, %v2285_v51  ;;  %1157 = sbr.rel (!%p2011_p4) target bundleno = 558 (0x22e), region = 40 }
 0x1dc   : > { %844 = vst.msk [vmem:[%s2289_s16 + $0xf0] sm:$0xff] %vm524_vm1, %v828_v61 }
 0x1dd   : > { %845 = vst.msk [vmem:[%s2289_s16 + $0xf8] sm:$0xff] %vm524_vm1, %v829_v27  ;;  %v1116_v29 = vpop.xlane.xlu0 %1115 }
 0x1de   : > { %v1118_v28 = vpop.xlane.xlu1 %1117  ;;  %v1133_v62 = vadd.f32 %v1116_v29, %v2285_v51 }
 0x1df   : > { %v1134_v30 = vadd.f32 %v1118_v28, %v2285_v51 }
 0x1e0   : > { %1149 = vst.msk [vmem:[%s2289_s16 + $0x170] sm:$0xff] %vm524_vm1, %v1133_v62 }
 0x1e1   : > { %1150 = vst.msk [vmem:[%s2289_s16 + $0x178] sm:$0xff] %vm524_vm1, %v1134_v30 }
 0x1e2   : > { %s2617_s17 = smov (!%p1160_p8, %s1159_s17), 48 }
 0x1e3   : > { %s1611_s26 = sshll.u32 %s2617_s17, 7 }
 0x1e4   : > { %p1614_p9 = scmp.eq.s32.totalorder %s1611_s26, 0 }
 0x1e5   : > { %1866 = sdivrem.u32 (!%p1614_p9), %s2617_s17, 48 }
 0x1e6   : > { %1168 = sbr.rel (%p1614_p9) target bundleno = 558 (0x22e), region = 44 }
 0x1ee   : > { %s2446_s24 = spop.drf %1866 }
 0x1ef   : > { %p1615_p10 = scmp.le.s32.totalorder %s2446_s24, 0 }
 0x1f0   : > { %s2608_s3 = smov (!%p1615_p10), %s2440_s25  ;;  %s2609_s27 = smov (!%p1615_p10), %s2289_s16 }
 0x1f1   : > { %1512 = sbr.rel (%p1615_p10) target bundleno = 529 (0x211), region = 120  ;;  %s2455_s28 = smov (!%p1615_p10), 0  }
 0x1f2   : > { %s2457_s29 = smov (!%p1615_p10), 0  }
 0x1f8 LB: >> { %v1326_v51 = vld [vmem:[%s1932_s27] sm:$0xff]  ;;  %v1328_v31 = vld [vmem:[%s1932_s27 + $0x8] sm:$0xff]  ;;  %v1330_v32 = vld [vmem:[%s1932_s27 + $0x10] sm:$0xff]  ;;  %s1422_s30 = sadd.s32 1, %s1936_s28  ;;  %s1320_s29 = sadd.s32 1, %s1940_s29   ;;  %s1940_s29 = sphi %s2457_s29, %s1320_s29   ;;  %s1936_s28 = sphi %s2455_s28, %s2612_s28   ;;  %s1932_s27 = sphi %s2609_s27, %s2611_s27   ;;  %s1928_s3 = sphi %s2608_s3, %s2610_s3  }
 0x1f9   : >> { %1327 = vst [vmem:[%s1928_s3] sm:$0xff] %v1326_v51  ;;  %1329 = vst [vmem:[%s1928_s3 + $0x8] sm:$0xff] %v1328_v31  ;;  %v1332_v33 = vld [vmem:[%s1932_s27 + $0x18] sm:$0xff]  ;;  %v1334_v34 = vld [vmem:[%s1932_s27 + $0x20] sm:$0xff]  ;;  %p1423_p11 = scmp.ge.s32.totalorder %s1422_s30, %s2446_s24  ;;  %p1319_p12 = scmp.ge.s32.totalorder %s1320_s29, %s2446_s24 }
 0x1fa   : >> { %1331 = vst [vmem:[%s1928_s3 + $0x10] sm:$0xff] %v1330_v32  ;;  %v1336_v35 = vld [vmem:[%s1932_s27 + $0x28] sm:$0xff]  ;;  %1333 = vst [vmem:[%s1928_s3 + $0x18] sm:$0xff] %v1332_v33  ;;  %v1338_v36 = vld [vmem:[%s1932_s27 + $0x30] sm:$0xff] }
 0x1fb   : >> { %1335 = vst [vmem:[%s1928_s3 + $0x20] sm:$0xff] %v1334_v34  ;;  %1337 = vst [vmem:[%s1928_s3 + $0x28] sm:$0xff] %v1336_v35  ;;  %v1340_v37 = vld [vmem:[%s1932_s27 + $0x38] sm:$0xff]  ;;  %v1342_v38 = vld [vmem:[%s1932_s27 + $0x40] sm:$0xff]  ;;  %s2619_s30 = smov (%p1423_p11, %s1422_s30), 0 }
 0x1fc   : >> { %1339 = vst [vmem:[%s1928_s3 + $0x30] sm:$0xff] %v1338_v36  ;;  %1341 = vst [vmem:[%s1928_s3 + $0x38] sm:$0xff] %v1340_v37  ;;  %v1344_v39 = vld [vmem:[%s1932_s27 + $0x48] sm:$0xff]  ;;  %v1346_v40 = vld [vmem:[%s1932_s27 + $0x50] sm:$0xff]  ;;  %s1425_s5 = smul.u32 384, %s2619_s30  ;;  %s2612_s28 = smov %s2619_s30 }
 0x1fd   : >> { %1343 = vst [vmem:[%s1928_s3 + $0x40] sm:$0xff] %v1342_v38  ;;  %v1348_v41 = vld [vmem:[%s1932_s27 + $0x58] sm:$0xff]  ;;  %1345 = vst [vmem:[%s1928_s3 + $0x48] sm:$0xff] %v1344_v39  ;;  %v1350_v42 = vld [vmem:[%s1932_s27 + $0x60] sm:$0xff] }
 0x1fe   : >> { %1347 = vst [vmem:[%s1928_s3 + $0x50] sm:$0xff] %v1346_v40  ;;  %1349 = vst [vmem:[%s1928_s3 + $0x58] sm:$0xff] %v1348_v41  ;;  %v1352_v44 = vld [vmem:[%s1932_s27 + $0x68] sm:$0xff]  ;;  %v1354_v45 = vld [vmem:[%s1932_s27 + $0x70] sm:$0xff]  ;;  %s2519_s6 = scalar_lea.vmem %s2289_s16, %s1425_s5 [#allocation3]   ;;  %s2522_s7 = scalar_lea.vmem %s2440_s25, %s1425_s5  }
 0x1ff   : >> { %1351 = vst [vmem:[%s1928_s3 + $0x60] sm:$0xff] %v1350_v42  ;;  %1353 = vst [vmem:[%s1928_s3 + $0x68] sm:$0xff] %v1352_v44  ;;  %v1356_v47 = vld [vmem:[%s1932_s27 + $0x78] sm:$0xff]  ;;  %v1358_v49 = vld [vmem:[%s1932_s27 + $0x80] sm:$0xff] }
 0x200   : >> { %1355 = vst [vmem:[%s1928_s3 + $0x70] sm:$0xff] %v1354_v45  ;;  %v1360_v52 = vld [vmem:[%s1932_s27 + $0x88] sm:$0xff]  ;;  %1357 = vst [vmem:[%s1928_s3 + $0x78] sm:$0xff] %v1356_v47  ;;  %v1362_v53 = vld [vmem:[%s1932_s27 + $0x90] sm:$0xff] }
 0x201   : >> { %1359 = vst [vmem:[%s1928_s3 + $0x80] sm:$0xff] %v1358_v49  ;;  %1361 = vst [vmem:[%s1928_s3 + $0x88] sm:$0xff] %v1360_v52  ;;  %v1364_v54 = vld [vmem:[%s1932_s27 + $0x98] sm:$0xff]  ;;  %v1366_v55 = vld [vmem:[%s1932_s27 + $0xa0] sm:$0xff] }
 0x202   : >> { %1363 = vst [vmem:[%s1928_s3 + $0x90] sm:$0xff] %v1362_v53  ;;  %1365 = vst [vmem:[%s1928_s3 + $0x98] sm:$0xff] %v1364_v54  ;;  %v1368_v5 = vld [vmem:[%s1932_s27 + $0xa8] sm:$0xff]  ;;  %v1370_v58 = vld [vmem:[%s1932_s27 + $0xb0] sm:$0xff] }
 0x203   : >> { %1367 = vst [vmem:[%s1928_s3 + $0xa0] sm:$0xff] %v1366_v55  ;;  %v1372_v60 = vld [vmem:[%s1932_s27 + $0xb8] sm:$0xff]  ;;  %1369 = vst [vmem:[%s1928_s3 + $0xa8] sm:$0xff] %v1368_v5  ;;  %v1374_v63 = vld [vmem:[%s1932_s27 + $0xc0] sm:$0xff] }
 0x204   : >> { %1371 = vst [vmem:[%s1928_s3 + $0xb0] sm:$0xff] %v1370_v58  ;;  %1373 = vst [vmem:[%s1928_s3 + $0xb8] sm:$0xff] %v1372_v60  ;;  %v1376_v0 = vld [vmem:[%s1932_s27 + $0xc8] sm:$0xff]  ;;  %v1378_v9 = vld [vmem:[%s1932_s27 + $0xd0] sm:$0xff] }
 0x205   : >> { %1375 = vst [vmem:[%s1928_s3 + $0xc0] sm:$0xff] %v1374_v63  ;;  %1377 = vst [vmem:[%s1928_s3 + $0xc8] sm:$0xff] %v1376_v0  ;;  %v1380_v1 = vld [vmem:[%s1932_s27 + $0xd8] sm:$0xff]  ;;  %v1382_v2 = vld [vmem:[%s1932_s27 + $0xe0] sm:$0xff] }
 0x206   : >> { %1379 = vst [vmem:[%s1928_s3 + $0xd0] sm:$0xff] %v1378_v9  ;;  %v1384_v6 = vld [vmem:[%s1932_s27 + $0xe8] sm:$0xff]  ;;  %1381 = vst [vmem:[%s1928_s3 + $0xd8] sm:$0xff] %v1380_v1  ;;  %v1386_v3 = vld [vmem:[%s1932_s27 + $0xf0] sm:$0xff] }
 0x207   : >> { %1383 = vst [vmem:[%s1928_s3 + $0xe0] sm:$0xff] %v1382_v2  ;;  %1385 = vst [vmem:[%s1928_s3 + $0xe8] sm:$0xff] %v1384_v6  ;;  %v1388_v59 = vld [vmem:[%s1932_s27 + $0xf8] sm:$0xff]  ;;  %v1390_v10 = vld [vmem:[%s1932_s27 + $0x100] sm:$0xff] }
 0x208   : >> { %1387 = vst [vmem:[%s1928_s3 + $0xf0] sm:$0xff] %v1386_v3  ;;  %1389 = vst [vmem:[%s1928_s3 + $0xf8] sm:$0xff] %v1388_v59  ;;  %v1392_v43 = vld [vmem:[%s1932_s27 + $0x108] sm:$0xff]  ;;  %v1394_v46 = vld [vmem:[%s1932_s27 + $0x110] sm:$0xff] }
 0x209   : >> { %1391 = vst [vmem:[%s1928_s3 + $0x100] sm:$0xff] %v1390_v10  ;;  %v1396_v48 = vld [vmem:[%s1932_s27 + $0x118] sm:$0xff]  ;;  %1393 = vst [vmem:[%s1928_s3 + $0x108] sm:$0xff] %v1392_v43  ;;  %v1398_v50 = vld [vmem:[%s1932_s27 + $0x120] sm:$0xff] }
 0x20a   : >> { %1395 = vst [vmem:[%s1928_s3 + $0x110] sm:$0xff] %v1394_v46  ;;  %1397 = vst [vmem:[%s1928_s3 + $0x118] sm:$0xff] %v1396_v48  ;;  %v1400_v4 = vld [vmem:[%s1932_s27 + $0x128] sm:$0xff]  ;;  %v1402_v7 = vld [vmem:[%s1932_s27 + $0x130] sm:$0xff]  ;;  %1322 = sbr.rel (!%p1319_p12) target bundleno = 504 (0x1f8), region = 126 }
 0x20b   : >> { %1399 = vst [vmem:[%s1928_s3 + $0x120] sm:$0xff] %v1398_v50  ;;  %1401 = vst [vmem:[%s1928_s3 + $0x128] sm:$0xff] %v1400_v4  ;;  %v1404_v56 = vld [vmem:[%s1932_s27 + $0x138] sm:$0xff]  ;;  %v1406_v8 = vld [vmem:[%s1932_s27 + $0x140] sm:$0xff] }
 0x20c   : >> { %1403 = vst [vmem:[%s1928_s3 + $0x130] sm:$0xff] %v1402_v7  ;;  %v1408_v11 = vld [vmem:[%s1932_s27 + $0x148] sm:$0xff]  ;;  %1405 = vst [vmem:[%s1928_s3 + $0x138] sm:$0xff] %v1404_v56  ;;  %v1410_v57 = vld [vmem:[%s1932_s27 + $0x150] sm:$0xff] }
 0x20d   : >> { %1407 = vst [vmem:[%s1928_s3 + $0x140] sm:$0xff] %v1406_v8  ;;  %1409 = vst [vmem:[%s1928_s3 + $0x148] sm:$0xff] %v1408_v11  ;;  %v1412_v12 = vld [vmem:[%s1932_s27 + $0x158] sm:$0xff]  ;;  %v1414_v13 = vld [vmem:[%s1932_s27 + $0x160] sm:$0xff] }
 0x20e   : >> { %1411 = vst [vmem:[%s1928_s3 + $0x150] sm:$0xff] %v1410_v57  ;;  %1413 = vst [vmem:[%s1928_s3 + $0x158] sm:$0xff] %v1412_v12  ;;  %v1416_v14 = vld [vmem:[%s1932_s27 + $0x168] sm:$0xff]  ;;  %v1418_v15 = vld [vmem:[%s1932_s27 + $0x170] sm:$0xff] }
 0x20f   : >> { %1415 = vst [vmem:[%s1928_s3 + $0x160] sm:$0xff] %v1414_v13  ;;  %v1420_v16 = vld [vmem:[%s1932_s27 + $0x178] sm:$0xff]  ;;  %1417 = vst [vmem:[%s1928_s3 + $0x168] sm:$0xff] %v1416_v14  ;;  %s2611_s27 = smov %s2519_s6 }
 0x210   : >> { %1419 = vst [vmem:[%s1928_s3 + $0x170] sm:$0xff] %v1418_v15  ;;  %1421 = vst [vmem:[%s1928_s3 + $0x178] sm:$0xff] %v1420_v16  ;;  %s2610_s3 = smov %s2522_s7 }
 0x211 PF: > { %1868 = sdivrem.u32 %s2617_s17, 48 }
 0x212   : > { %s1616_s8 = smul.u32 384, %s2446_s24 }
 0x214   : > { %s1433_s9 = scalar_lea.vmem %s2289_s16, %s1616_s8 [#allocation3]   ;;  %s1435_s10 = scalar_lea.vmem %s2440_s25, %s1616_s8  }
 0x21a   : > { %s1869_s11 = spop.drf %1868 }
 0x21b   : > { %p1618_p13 = scmp.le.s32.totalorder %s1869_s11, 0 }
 0x21c   : > { %s1942_s12 = smov (!%p1618_p13), %s1435_s10   ;;  %s1946_s13 = smov (!%p1618_p13), %s1433_s9  }
 0x21d   : > { %1526 = sbr.rel (%p1618_p13) target bundleno = 558 (0x22e), region = 131  ;;  %s1950_s14 = smov (!%p1618_p13), 0  }
 0x21e   : > { %s1954_s15 = smov (!%p1618_p13), 0  }
 0x224 LB: >> { %v1445_v17 = vld [vmem:[%s1948_s13] sm:$0xff]  ;;  %s1447_s19 = sadd.s32 1, %s1952_s14  ;;  %s1439_s15 = sadd.s32 1, %s1956_s15   ;;  %s1956_s15 = sphi %s1954_s15, %s1439_s15   ;;  %s1952_s14 = sphi %s1950_s14, %s1951_s14   ;;  %s1948_s13 = sphi %s1946_s13, %s1452_s13   ;;  %s1944_s12 = sphi %s1942_s12, %s1453_s12  }
 0x225   : >> { %1446 = vst [vmem:[%s1944_s12] sm:$0xff] %v1445_v17  ;;  %p1448_p0 = scmp.ge.s32.totalorder %s1447_s19, %s1869_s11  ;;  %p1438_p1 = scmp.ge.s32.totalorder %s1439_s15, %s1869_s11 }
 0x227   : >> { %s2621_s19 = smov (%p1448_p0, %s1447_s19), 0  ;;  %1441 = sbr.rel (!%p1438_p1) target bundleno = 548 (0x224), region = 137 }
 0x228   : >> { %s1619_s16 = sshll.u32 %s2621_s19, 3  ;;  %s1951_s14 = smov %s2621_s19  }
 0x229   : >> { %s1452_s13 = scalar_lea.vmem %s1433_s9, %s1619_s16 [#allocation3]   ;;  %s1453_s12 = scalar_lea.vmem %s1435_s10, %s1619_s16  }
 0x22e PF: > { %p12_p2 = scmp.ge.s32.totalorder %s2001_s20, 4   ;;  %s2613_s17 = smov %s1920_s18 }
 0x22f   : > { %s2614_s18 = smov %s2009_s23  ;;  %s2615_s19 = smov %s2001_s20 }
 0x230   :  { %14 = sbr.rel (!%p12_p2) target bundleno = 4 (0x4), region = 148 }

</bundles_post_ra>
